<compile_context>
chip_gen: v7x
topology: tpu7x:2x2x1
jax: 0.10.0
libtpu: 0.0.40
codegen_flags: <defaults>
</compile_context>

<pallas_src>
import functools

import jax
import jax.numpy as jnp
from jax.experimental import pallas as pl
from jax.experimental.pallas import tpu as pltpu

N, L, D = 2, 8, 32   # batch, seq, hidden — small shapes consistent with the module


def _kl_rows(x, t):
    """Per-row KLDiv (summed over the last axis):
       sum_d softmax(t) * (log_softmax(t) - log_softmax(x)). Works for 2-D or 3-D."""
    # log_softmax(x)
    x_max = jnp.max(x, axis=-1, keepdims=True)
    x_sh = x - x_max
    log_p = x_sh - jnp.log(jnp.sum(jnp.exp(x_sh), axis=-1, keepdims=True))
    # softmax(t) and log_softmax(t)
    t_max = jnp.max(t, axis=-1, keepdims=True)
    t_sh = t - t_max
    t_exp = jnp.exp(t_sh)
    t_sum = jnp.sum(t_exp, axis=-1, keepdims=True)
    q = t_exp / t_sum
    log_q = t_sh - jnp.log(t_sum)
    return jnp.sum(q * (log_q - log_p), axis=-1)     # (..., rows)


def _kl_masked_kernel(mask_ref, x_ref, t_ref, out_ref, *, scale):
    x = x_ref[...]          # (N, L, D) f32
    t = t_ref[...]          # (N, L, D) f32
    mask = mask_ref[...]    # (N, L)    f32

    # m = number of mask entries > 0 per batch; keep rows with index < m.
    # This exactly reproduces the torch module's `x[idx, :m, :]` slicing.
    m = jnp.sum((mask > 0.0).astype(jnp.int32), axis=-1, keepdims=True)     # (N, 1)
    row_idx = jax.lax.broadcasted_iota(jnp.int32, mask.shape, 1)            # (N, L)
    row_valid = (row_idx < m).astype(jnp.float32)                           # (N, L)

    row_kl = _kl_rows(x, t)                                                 # (N, L)
    out_ref[0, 0] = jnp.sum(row_kl * row_valid) * scale


def _kl_plain_kernel(x_ref, t_ref, out_ref):
    out_ref[0, 0] = jnp.sum(_kl_rows(x_ref[...], t_ref[...]))


def clip_dis_feat_pallas(x, target, mask=None):
    """Pallas port of clip_dis_feat.forward. Returns a scalar float32 loss."""
    if x.ndim == 3:
        n, l, d = x.shape
        kernel = functools.partial(_kl_masked_kernel, scale=10.0 / n)
        out = pl.pallas_call(
            kernel,
            out_shape=jax.ShapeDtypeStruct((1, 1), jnp.float32),
            grid=(1,),
            in_specs=[
                pl.BlockSpec((n, l), lambda i: (0, 0)),         # mask
                pl.BlockSpec((n, l, d), lambda i: (0, 0, 0)),   # x
                pl.BlockSpec((n, l, d), lambda i: (0, 0, 0)),   # target
            ],
            out_specs=pl.BlockSpec((1, 1), lambda i: (0, 0),
                                   memory_space=pltpu.MemorySpace.SMEM),
            compiler_params=pltpu.CompilerParams(
                dimension_semantics=("arbitrary",)),
        )(mask.astype(jnp.float32), x.astype(jnp.float32),
          target.astype(jnp.float32))
        return out[0, 0]
    elif x.ndim == 2:
        r, d = x.shape
        out = pl.pallas_call(
            _kl_plain_kernel,
            out_shape=jax.ShapeDtypeStruct((1, 1), jnp.float32),
            grid=(1,),
            in_specs=[
                pl.BlockSpec((r, d), lambda i: (0, 0)),
                pl.BlockSpec((r, d), lambda i: (0, 0)),
            ],
            out_specs=pl.BlockSpec((1, 1), lambda i: (0, 0),
                                   memory_space=pltpu.MemorySpace.SMEM),
            compiler_params=pltpu.CompilerParams(
                dimension_semantics=("arbitrary",)),
        )(x.astype(jnp.float32), target.astype(jnp.float32))
        return out[0, 0]
    else:
        # Module returns 0 for other ranks (loss starts at 0 and no branch taken).
        return jnp.float32(0.0)


def clip_dis_feat_reference(x, target, mask=None):
    """Pure-JAX reference mirroring the torch module exactly."""
    if x.ndim == 3:
        loss = jnp.float32(0.0)
        for idx in range(x.shape[0]):
            m = int(jnp.sum(mask[idx] > 0))
            log_p = jax.nn.log_softmax(x[idx, :m, :], axis=-1)
            q = jax.nn.softmax(target[idx, :m, :], axis=-1)
            loss = loss + jnp.sum(q * (jnp.log(q) - log_p))
        return loss / x.shape[0] * 10.0
    elif x.ndim == 2:
        log_p = jax.nn.log_softmax(x, axis=-1)
        q = jax.nn.softmax(target, axis=-1)
        return jnp.sum(q * (jnp.log(q) - log_p))
    return jnp.float32(0.0)


if __name__ == "__main__":
    key = jax.random.PRNGKey(0)
    kx, kt, kx2, kt2 = jax.random.split(key, 4)

    # 3-D (masked, per-batch) branch.
    x = jax.random.normal(kx, (N, L, D), jnp.float32)
    target = jax.random.normal(kt, (N, L, D), jnp.float32)
    # 1 = valid token, 0 = padding; batch 0 has 6 valid rows, batch 1 has 5.
    mask = jnp.array([[1, 1, 1, 1, 1, 1, 0, 0],
                      [1, 1, 1, 1, 1, 0, 0, 0]], dtype=jnp.float32)

    loss3d = jax.block_until_ready(clip_dis_feat_pallas(x, target, mask))
    ref3d = clip_dis_feat_reference(x, target, mask)
    assert jnp.allclose(loss3d, ref3d, atol=1e-4, rtol=1e-4), \
        f"3D mismatch: {loss3d} vs {ref3d}"

    # 2-D branch.
    x2 = jax.random.normal(kx2, (L, D), jnp.float32)
    t2 = jax.random.normal(kt2, (L, D), jnp.float32)
    loss2d = jax.block_until_ready(clip_dis_feat_pallas(x2, t2))
    ref2d = clip_dis_feat_reference(x2, t2)
    assert jnp.allclose(loss2d, ref2d, atol=1e-4, rtol=1e-4), \
        f"2D mismatch: {loss2d} vs {ref2d}"

    print("KERNEL_OK")
</pallas_src>

<mosaic_0001>
module attributes {stable_mosaic.version = 11 : i64} {
  func.func @_kl_masked_kernel(%arg0: i32, %arg1: memref<2x8xf32, #tpu.memory_space<vmem>>, %arg2: memref<2x8x32xf32, #tpu.memory_space<vmem>>, %arg3: memref<2x8x32xf32, #tpu.memory_space<vmem>>, %arg4: memref<1x1xf32, #tpu.memory_space<smem>>) attributes {dimension_semantics = [#tpu.dimension_semantics<arbitrary>], iteration_bounds = array<i64: 1>, scalar_prefetch = 0 : i64, scratch_operands = 0 : i64, tpu.core_type = #tpu.core_type<tc>, window_params = [{pipeline_mode = #tpu.pipeline_mode<synchronous>, transform_indices = @transform_0, window_bounds = array<i64: 2, 8>}, {pipeline_mode = #tpu.pipeline_mode<synchronous>, transform_indices = @transform_1, window_bounds = array<i64: 2, 8, 32>}, {pipeline_mode = #tpu.pipeline_mode<synchronous>, transform_indices = @transform_2, window_bounds = array<i64: 2, 8, 32>}, {transform_indices = @transform_3, window_bounds = array<i64: 1, 1>}]} {
    %c0 = arith.constant 0 : index
    %c0_0 = arith.constant 0 : index
    %c0_1 = arith.constant 0 : index
    %0 = vector.load %arg2[%c0, %c0_0, %c0_1] : memref<2x8x32xf32, #tpu.memory_space<vmem>>, vector<2x8x32xf32>
    %c0_2 = arith.constant 0 : index
    %c0_3 = arith.constant 0 : index
    %c0_4 = arith.constant 0 : index
    %1 = vector.load %arg3[%c0_2, %c0_3, %c0_4] : memref<2x8x32xf32, #tpu.memory_space<vmem>>, vector<2x8x32xf32>
    %c0_5 = arith.constant 0 : index
    %c0_6 = arith.constant 0 : index
    %2 = vector.load %arg1[%c0_5, %c0_6] : memref<2x8xf32, #tpu.memory_space<vmem>>, vector<2x8xf32>
    %cst = arith.constant 0.000000e+00 : f32
    %3 = vector.broadcast %cst : f32 to vector<2x8xf32>
    %4 = arith.cmpf ogt, %2, %3 : vector<2x8xf32>
    %5 = arith.extui %4 : vector<2x8xi1> to vector<2x8xi32>
    %cst_7 = arith.constant dense<0> : vector<2xi32>
    %6 = vector.multi_reduction <add>, %5, %cst_7 [1] : vector<2x8xi32> to vector<2xi32>
    %7 = vector.shape_cast %6 : vector<2xi32> to vector<2x1xi32>
    %8 = tpu.iota {dimensions = array<i32: 1>} : vector<2x8xi32>
    %9 = vector.broadcast %7 : vector<2x1xi32> to vector<2x8xi32>
    %10 = arith.cmpi slt, %8, %9 : vector<2x8xi32>
    %11 = arith.extui %10 : vector<2x8xi1> to vector<2x8xi32>
    %12 = arith.sitofp %11 : vector<2x8xi32> to vector<2x8xf32>
    %cst_8 = arith.constant dense<0xFF800000> : vector<2x8xf32>
    %13 = vector.multi_reduction <maximumf>, %0, %cst_8 [2] : vector<2x8x32xf32> to vector<2x8xf32>
    %14 = vector.shape_cast %13 : vector<2x8xf32> to vector<2x8x1xf32>
    %15 = vector.broadcast %14 : vector<2x8x1xf32> to vector<2x8x32xf32>
    %16 = arith.subf %0, %15 : vector<2x8x32xf32>
    %17 = math.exp %16 : vector<2x8x32xf32>
    %cst_9 = arith.constant dense<0.000000e+00> : vector<2x8xf32>
    %18 = vector.multi_reduction <add>, %17, %cst_9 [2] : vector<2x8x32xf32> to vector<2x8xf32>
    %19 = vector.shape_cast %18 : vector<2x8xf32> to vector<2x8x1xf32>
    %20 = math.log %19 : vector<2x8x1xf32>
    %21 = vector.broadcast %20 : vector<2x8x1xf32> to vector<2x8x32xf32>
    %22 = arith.subf %16, %21 : vector<2x8x32xf32>
    %cst_10 = arith.constant dense<0xFF800000> : vector<2x8xf32>
    %23 = vector.multi_reduction <maximumf>, %1, %cst_10 [2] : vector<2x8x32xf32> to vector<2x8xf32>
    %24 = vector.shape_cast %23 : vector<2x8xf32> to vector<2x8x1xf32>
    %25 = vector.broadcast %24 : vector<2x8x1xf32> to vector<2x8x32xf32>
    %26 = arith.subf %1, %25 : vector<2x8x32xf32>
    %27 = math.exp %26 : vector<2x8x32xf32>
    %cst_11 = arith.constant dense<0.000000e+00> : vector<2x8xf32>
    %28 = vector.multi_reduction <add>, %27, %cst_11 [2] : vector<2x8x32xf32> to vector<2x8xf32>
    %29 = vector.shape_cast %28 : vector<2x8xf32> to vector<2x8x1xf32>
    %30 = vector.broadcast %29 : vector<2x8x1xf32> to vector<2x8x32xf32>
    %31 = arith.divf %27, %30 : vector<2x8x32xf32>
    %32 = math.log %29 : vector<2x8x1xf32>
    %33 = vector.broadcast %32 : vector<2x8x1xf32> to vector<2x8x32xf32>
    %34 = arith.subf %26, %33 : vector<2x8x32xf32>
    %35 = arith.subf %34, %22 : vector<2x8x32xf32>
    %36 = arith.mulf %31, %35 : vector<2x8x32xf32>
    %cst_12 = arith.constant dense<0.000000e+00> : vector<2x8xf32>
    %37 = vector.multi_reduction <add>, %36, %cst_12 [2] : vector<2x8x32xf32> to vector<2x8xf32>
    %38 = arith.mulf %37, %12 : vector<2x8xf32>
    %39 = vector.shape_cast %38 : vector<2x8xf32> to vector<1x2x8xf32>
    %cst_13 = arith.constant dense<0.000000e+00> : vector<1xf32>
    %40 = vector.multi_reduction <add>, %39, %cst_13 [1, 2] : vector<1x2x8xf32> to vector<1xf32>
    %41 = vector.shape_cast %40 : vector<1xf32> to vector<1x1x1xf32>
    %42 = vector.extract %41[0, 0, 0] : f32 from vector<1x1x1xf32>
    %cst_14 = arith.constant 5.000000e+00 : f32
    %43 = arith.mulf %42, %cst_14 : f32
    %c0_15 = arith.constant 0 : index
    %c0_16 = arith.constant 0 : index
    %44 = memref.load %arg4[%c0_15, %c0_16] : memref<1x1xf32, #tpu.memory_space<smem>>
    memref.store %43, %arg4[%c0_15, %c0_16] : memref<1x1xf32, #tpu.memory_space<smem>>
    return
  }
  func.func @transform_0(%arg0: i32) -> (i32, i32) {
    %c0_i32 = arith.constant 0 : i32
    %c0_i32_0 = arith.constant 0 : i32
    %c0_i32_1 = arith.constant 0 : i32
    return %c0_i32, %c0_i32_0 : i32, i32
  }
  func.func @transform_1(%arg0: i32) -> (i32, i32, i32) {
    %c0_i32 = arith.constant 0 : i32
    %c0_i32_0 = arith.constant 0 : i32
    %c0_i32_1 = arith.constant 0 : i32
    %c0_i32_2 = arith.constant 0 : i32
    return %c0_i32, %c0_i32_0, %c0_i32_1 : i32, i32, i32
  }
  func.func @transform_2(%arg0: i32) -> (i32, i32, i32) {
    %c0_i32 = arith.constant 0 : i32
    %c0_i32_0 = arith.constant 0 : i32
    %c0_i32_1 = arith.constant 0 : i32
    %c0_i32_2 = arith.constant 0 : i32
    return %c0_i32, %c0_i32_0, %c0_i32_1 : i32, i32, i32
  }
  func.func @transform_3(%arg0: i32) -> (i32, i32) {
    %c0_i32 = arith.constant 0 : i32
    %c0_i32_0 = arith.constant 0 : i32
    %c0_i32_1 = arith.constant 0 : i32
    return %c0_i32, %c0_i32_0 : i32, i32
  }
}

</mosaic_0001>

<bundles_post_ra>
// kernel: tpu_custom_call.1
= control target key start
LH: loop header
LB: loop body
LE: loop exit
PB: predicated region body
PF: predicated region fallthrough
CT: control target
= control target key end

     0   :  { %8 = vsyncpa [#allocation3], 0  ;;  %s418_s0 = inlined_call_operand.hbm [shape: f32[2,8], index: 0, kind: input, shape index: {}]   ;;  %s419_s1 = inlined_call_operand.hbm [shape: f32[2,8,32], index: 1, kind: input, shape index: {}]   ;;  %s420_s2 = inlined_call_operand.hbm [shape: f32[2,8,32], index: 2, kind: input, shape index: {}]   ;;  %s421_s3 = inlined_call_operand.hbm [shape: f32[1,1], index: 3, kind: output, shape index: {}]  }
   0x1   :  { %9 = vsyncpa [#allocation6], 0 }
   0x2   :  { %10 = vsyncpa [#allocation4], 0  ;;  %s324_s12 = smov [#allocation5]   ;;  %s242_s16 = scalar_lea.hbm %s419_s1, 256 }
   0x3   :  { %s26_s13 = sshll.u32 %s324_s12, 4  ;;  %p243_p0 = scmp.ne.s32.totalorder %s419_s1, %s242_s16  ;;  %s27_s13 = int_to_ptr.vmem [resolvable:$true] %s26_s13 }
   0x4   :  { %p246_p1 = scmp.lt.u32.totalorder %s242_s16, %s419_s1 }
   0x6   :  { %p248_p2 = pnand %p246_p1, %p243_p0 }
   0x8   :  { %251 = shalt.err (!%p248_p2)
}
   0x9   :  { %s252_s21 = scalar_lea.vmem %s27_s13, 256  ;;  %p257_p4 = scmp.lt.s32.totalorder %s27_s13, %s27_s13 }
   0xa   :  { %p253_p3 = scmp.ne.s32.totalorder %s27_s13, %s252_s21  ;;  %p258_p5 = scmp.lt.s32.totalorder %s252_s21, %s252_s21 }
   0xc   :  { %p259_p6 = por %p258_p5, %p257_p4 }
   0xe   :  { %p260_p7 = pnand %p259_p6, %p253_p3 }
  0x10   :  { %263 = shalt.err (!%p260_p7)
}
  0x11   :  { %s325_s22 = smov 128   ;;  %s326_s23 = smov 8  }
  0x12   :  { %32 = dma.hbm_to_vmem [thread:$0]  %s419_s1, 256, %s27_s13, [#allocation6], %s325_s22, %s325_s22, %s326_s23  }
  0x13   :  { %s327_s26 = smov [#allocation2]   ;;  %s328_s28 = smov [#allocation7]  }
  0x14   :  { %s17_s27 = sshll.u32 %s327_s26, 4  ;;  %s38_s29 = sshll.u32 %s328_s28, 4  ;;  %s18_s27 = int_to_ptr.vmem [resolvable:$true] %s17_s27  ;;  %s39_s29 = int_to_ptr.vmem [resolvable:$true] %s38_s29 }
  0x15   :  { %s264_s5 = scalar_lea.hbm %s418_s0, 32 }
  0x16   :  { %p265_p8 = scmp.ne.s32.totalorder %s418_s0, %s264_s5  ;;  %p268_p9 = scmp.lt.u32.totalorder %s264_s5, %s418_s0 }
  0x18   :  { %p270_p10 = pnand %p268_p9, %p265_p8 }
  0x1a   :  { %273 = shalt.err (!%p270_p10)
}
  0x1b   :  { %s274_s1 = scalar_lea.vmem %s18_s27, 32  ;;  %p279_p12 = scmp.lt.s32.totalorder %s18_s27, %s18_s27 }
  0x1c   :  { %p275_p11 = scmp.ne.s32.totalorder %s18_s27, %s274_s1  ;;  %p280_p13 = scmp.lt.s32.totalorder %s274_s1, %s274_s1 }
  0x1e   :  { %p281_p0 = por %p280_p13, %p279_p12 }
  0x20   :  { %p282_p1 = pnand %p281_p0, %p275_p11 }
  0x22   :  { %285 = shalt.err (!%p282_p1)
}
  0x23   :  { %20 = dma.hbm_to_vmem [thread:$0]  %s418_s0, 32, %s18_s27, [#allocation3]  }
  0x24   :  { %s286_s14 = scalar_lea.hbm %s420_s2, 256 }
  0x25   :  { %p287_p2 = scmp.ne.s32.totalorder %s420_s2, %s286_s14  ;;  %p290_p3 = scmp.lt.u32.totalorder %s286_s14, %s420_s2 }
  0x27   :  { %p292_p4 = pnand %p290_p3, %p287_p2 }
  0x29   :  { %295 = shalt.err (!%p292_p4)
}
  0x2a   :  { %s296_s19 = scalar_lea.vmem %s39_s29, 256  ;;  %p301_p6 = scmp.lt.s32.totalorder %s39_s29, %s39_s29 }
  0x2b   :  { %p297_p5 = scmp.ne.s32.totalorder %s39_s29, %s296_s19  ;;  %p302_p7 = scmp.lt.s32.totalorder %s296_s19, %s296_s19 }
  0x2d   :  { %p303_p8 = por %p302_p7, %p301_p6 }
  0x2f   :  { %p304_p9 = pnand %p303_p8, %p297_p5 }
  0x31   :  { %307 = shalt.err (!%p304_p9)
}
  0x32   :  { %44 = dma.hbm_to_vmem [thread:$0]  %s420_s2, 256, %s39_s29, [#allocation6], %s325_s22, %s325_s22, %s326_s23  }
  0x33   :  { %318 = dma.done.wait [#allocation3], 32  }
  0x34   :  { %319 = vsyncadd [#allocation3], 4294967264 }
  0x35   :  { %320 = dma.done.wait [#allocation6], 512  }
  0x36   :  { %321 = vsyncadd [#allocation6], 4294966784  ;;  %vm80_vm0 = vcmask 261120   ;;  %v54_v0 = vld [vmem:[#allocation5] sm:$0xff]  ;;  %v56_v1 = vld [vmem:[#allocation7] sm:$0xff]  ;;  %v329_v8 = vmov 0  }
  0x37   :  { %v55_v2 = vld [vmem:[#allocation5 + $0x8] sm:$0xff]  ;;  %v81_v3 = vsel %vm80_vm0, %v54_v0, -inf  ;;  %v105_v4 = vsel %vm80_vm0, %v56_v1, -inf  ;;  %v57_v5 = vld [vmem:[#allocation7 + $0x8] sm:$0xff]  ;;  %220 = vset.pattern.permute.xlu1 %v329_v8  ;;  %221 = vset.pattern.permute.xlu0 %v329_v8  ;;  %vm61_vm2 = vcmask 58368   ;;  %vm178_vm4 = vcmask 1041409  }
  0x38   :  { %82 = vmax.xlane.f32.xlu0 %v81_v3  ;;  %106 = vmax.xlane.f32.xlu1 %v105_v4  ;;  %v84_v6 = vsel %vm80_vm0, %v55_v2, -inf  ;;  %v108_v7 = vsel %vm80_vm0, %v57_v5, -inf  ;;  %v58_v19 = vld [vmem:[#allocation2] sm:$0x3]  ;;  %v75_v3 = vlaneseq  ;;  %s308_s24 = scalar_lea.hbm %s421_s3, 16 }
  0x39   :  { %vm59_vm1 = vcmp.gt.f32.partialorder %v58_v19, 0.0  ;;  %p309_p10 = scmp.ne.s32.totalorder %s421_s3, %s308_s24  ;;  %p312_p11 = scmp.lt.u32.totalorder %s308_s24, %s421_s3 }
  0x3a   :  { %v60_v22 = vsel %vm59_vm1, 1, %v329_v8  ;;  %v330_v8 = vmov 0.0  }
  0x3b   :  { %v62_v23 = vsel %vm61_vm2, %v60_v22, 0  ;;  %p314_p12 = pnand %p312_p11, %p309_p10 }
  0x3c   :  { %85 = vmax.xlane.f32.xlu0 %v84_v6  ;;  %109 = vmax.xlane.f32.xlu1 %v108_v7  ;;  %v64_v27 = vshrl.u32 %v62_v23, 16  ;;  %v63_v33 = vand.u32 65535, %v62_v23  ;;  %v145_v6 = vshrl.u32 %v75_v3, 7 }
  0x3e   :  { %v66_v32 = vcvt.s32.f32 %v64_v27  ;;  %v65_v35 = vcvt.s32.f32 %v63_v33  ;;  %v153_v7 = vsub.s32 1, %v145_v6 }
  0xc5   :  { %v83_v9 = vpop.xlane.xlu0 %82  ;;  %v107_v10 = vpop.xlane.xlu1 %106 }
  0xc6   :  { %v87_v11 = vsub.f32 %v54_v0, %v83_v9  ;;  %v111_v12 = vsub.f32 %v56_v1, %v107_v10  ;;  %v146_v10 = vsub.s32 0, %v145_v6 }
  0xc8   :  { %v89_v13 = vmul.f32 1.442695, %v87_v11  ;;  %v113_v14 = vmul.f32 1.442695, %v111_v12 }
  0xc9   :  { %v86_v15 = vpop.xlane.xlu0 %85  ;;  %v110_v16 = vpop.xlane.xlu1 %109 }
  0xca   :  { %222 = vpow2.f32 %v89_v13  ;;  %v88_v17 = vsub.f32 %v55_v2, %v86_v15  ;;  %v112_v18 = vsub.f32 %v57_v5, %v110_v16  ;;  %v76_v5 = vand.u32 127, %v75_v3 }
  0xcb   :  { %224 = vpow2.f32 %v113_v14 }
  0xcc   :  { %v91_v20 = vmul.f32 1.442695, %v88_v17  ;;  %v115_v21 = vmul.f32 1.442695, %v112_v18 }
  0xce   :  { %226 = vpow2.f32 %v91_v20  ;;  %v172_v20 = vsub.s32 %v76_v5, %v145_v6 }
  0xcf   :  { %228 = vpow2.f32 %v115_v21 }
  0xd4   :  { %v223_v24 = vpop.eup %222 }
  0xd5   :  { %v225_v25 = vpop.eup %224  ;;  %v93_v26 = vsel %vm80_vm0, %v223_v24, 0.0 }
  0xd6   :  { %94 = vadd.xlane.f32.xlu0 %v93_v26  ;;  %v117_v28 = vsel %vm80_vm0, %v225_v25, 0.0 }
  0xd8   :  { %v227_v29 = vpop.eup %226 }
  0xd9   :  { %v229_v30 = vpop.eup %228  ;;  %v96_v31 = vsel %vm80_vm0, %v227_v29, 0.0 }
  0xda   :  { %118 = vadd.xlane.f32.xlu0 %v117_v28  ;;  %97 = vadd.xlane.f32.xlu1 %v96_v31  ;;  %v120_v34 = vsel %vm80_vm0, %v229_v30, 0.0 }
  0xde   :  { %121 = vadd.xlane.f32.xlu1 %v120_v34  ;;  %69 = vadd.xlane.f32.xlu0 %v66_v32 }
  0xe2   :  { %67 = vadd.xlane.f32.xlu1 %v65_v35 }
 0x163   :  { %v95_v36 = vpop.xlane.xlu0 %94 }
 0x164   :  { %230 = vlog2.f32 %v95_v36 }
 0x167   :  { %v98_v37 = vpop.xlane.xlu1 %97  ;;  %v119_v38 = vpop.xlane.xlu0 %118 }
 0x168   :  { %232 = vlog2.f32 %v98_v37 }
 0x169   :  { %234 = vlog2.f32 %v119_v38 }
 0x16a   :  { %236 = vrcp.f32 %v119_v38 }
 0x16b   :  { %v122_v39 = vpop.xlane.xlu1 %121  ;;  %v70_v54 = vpop.xlane.xlu0 %69 }
 0x16c   :  { %238 = vlog2.f32 %v122_v39  ;;  %v72_v60 = vcvt.f32.s32 %v70_v54 }
 0x16d   :  { %240 = vrcp.f32 %v122_v39 }
 0x16e   :  { %v231_v40 = vpop.eup %230  ;;  %v73_v1 = vshll.u32 %v72_v60, 16 }
 0x16f   :  { %v100_v42 = vmul.f32 0.6931472, %v231_v40  ;;  %v68_v62 = vpop.xlane.xlu1 %67 }
 0x170   :  { %v71_v2 = vcvt.f32.s32 %v68_v62 }
 0x171   :  { %v103_v48 = vsub.f32 %v87_v11, %v100_v42 }
 0x172   :  { %v233_v41 = vpop.eup %232  ;;  %v74_v4 = vadd.s32 %v73_v1, %v71_v2 }
 0x173   :  { %v235_v43 = vpop.eup %234  ;;  %v102_v46 = vmul.f32 0.6931472, %v233_v41 }
 0x174   :  { %v128_v44 = vmul.f32 0.6931472, %v235_v43  ;;  %v237_v45 = vpop.eup %236  ;;  %vm77_vm3 = vcmp.lt.s32.totalorder %v76_v5, %v74_v4 }
 0x175   :  { %v124_v52 = vmul.f32 %v237_v45, %v225_v25  ;;  %v104_v55 = vsub.f32 %v88_v17, %v102_v46  ;;  %v209_v9 = vsel %vm77_vm3, 1.0, %v330_v8 }
 0x176   :  { %v239_v47 = vpop.eup %238  ;;  %v131_v49 = vsub.f32 %v111_v12, %v128_v44  ;;  %v154_v11 = vrot.slane %v209_v9, %v153_v7  ;;  %v147_v12 = vrot.slane %v209_v9, %v146_v10 }
 0x177   :  { %v130_v50 = vmul.f32 0.6931472, %v239_v47  ;;  %v241_v51 = vpop.eup %240 }
 0x178   :  { %v133_v53 = vsub.f32 %v131_v49, %v103_v48  ;;  %v126_v58 = vmul.f32 %v241_v51, %v229_v30 }
 0x179   :  { %v132_v56 = vsub.f32 %v112_v18, %v130_v50 }
 0x17a   :  { %v135_v57 = vmul.f32 %v133_v53, %v124_v52 }
 0x17b   :  { %v134_v59 = vsub.f32 %v132_v56, %v104_v55 }
 0x17c   :  { %v137_v61 = vsel %vm80_vm0, %v135_v57, 0.0 }
 0x17d   :  { %138 = vadd.xlane.f32.xlu0 %v137_v61  ;;  %v136_v63 = vmul.f32 %v134_v59, %v126_v58 }
 0x17f   :  { %v140_v0 = vsel %vm80_vm0, %v136_v63, 0.0 }
 0x180   :  { %141 = vadd.xlane.f32.xlu1 %v140_v0 }
 0x191   :  { %156 = vbcast.lane.b32.xlu1 %v154_v11, 256 }
 0x193   :  { %149 = vbcast.lane.b32.xlu0 %v147_v12, 256 }
 0x20a   :  { %v139_v13 = vpop.xlane.xlu0 %138 }
 0x20d   :  { %v142_v14 = vpop.xlane.xlu1 %141 }
 0x20e   :  { %v150_v15 = vpop.permute.xlu0 %149 }
 0x20f   :  { %v160_v16 = vmul.f32 %v150_v15, %v139_v13 }
 0x211   :  { %165 = vperm.xlu1 %220, %v160_v16   ;;  %v157_v17 = vpop.permute.xlu1 %156 }
 0x212   :  { %v161_v18 = vmul.f32 %v157_v17, %v142_v14 }
 0x215   :  { %168 = vperm.xlu1 %220, %v161_v18  }
 0x290   :  { %v166_v19 = vpop.permute.xlu1 %165 }
 0x291   :  { %v173_v22 = vrot.slane %v166_v19, %v172_v20 }
 0x294   :  { %v169_v21 = vpop.permute.xlu1 %168 }
 0x295   :  { %v177_v23 = vrot.slane %v169_v21, %v172_v20 }
 0x297   :  { %v179_v24 = vsel %vm178_vm4, %v177_v23, %v173_v22 }
 0x298   :  { %v181_v25 = vsel %vm61_vm2, %v179_v24, 0.0 }
 0x299   :  { %182 = vadd.xlane.f32.xlu0 %v181_v25 }
 0x326   :  { %v183_v26 = vpop.xlane.xlu0 %182 }
 0x327   :  { %v184_v27 = vrot.slane %v183_v26, 4 }
 0x329   :  { %v185_v28 = vadd.f32 %v184_v27, %v183_v26 }
 0x32b   :  { %v186_v29 = vrot.slane %v185_v28, 2 }
 0x32d   :  { %v187_v30 = vadd.f32 %v186_v29, %v185_v28 }
 0x32f   :  { %v188_v31 = vrot.slane %v187_v30, 1 }
 0x331   :  { %v189_v32 = vadd.f32 %v188_v31, %v187_v30 }
 0x333   :  { %210 = vpush %v189_v32 }
 0x364   :  { %s211_s2 = spop %210 }
 0x365   :  { %s191_s21 = smul.f32 5.0, %s211_s2 }
 0x367   :  { %193 = sst [smem:[#allocation8]] %s191_s21 }
 0x368   :  { %317 = shalt.err (!%p314_p12)
}
 0x369   :  { %s331_s29 = smov [#allocation8]  }
 0x36a   :  { %201 = dma.smem_to_hbm %s331_s29, 16, %s421_s3, [#allocation4]  }
 0x36b   :  { %322 = dma.done.wait [#allocation4], 16  }
 0x36c   :  { %323 = vsyncadd [#allocation4], 4294967280 }
 0x36d   :  { %205 = sfence }
 0x36e   :  { %206 = vsyncpa [#allocation3], 1 }
 0x36f   :  { %207 = vsyncpa [#allocation6], 1 }
 0x370   :  { %208 = vsyncpa [#allocation4], 1 }

</bundles_post_ra>
